<compile_context>
chip_gen: v7x
topology: tpu7x:2x2x1
jax: 0.10.0
libtpu: 0.0.40
codegen_flags: <defaults>
</compile_context>

<pallas_src>
import math

import jax
import jax.numpy as jnp
from jax.experimental import pallas as pl
from jax.experimental.pallas import tpu as pltpu


def _round_up(a, m):
    return (a + m - 1) // m * m


# ---------------------------------------------------------------------------
# Kernel A: pos_enc = softmax_K( -(pos-mu)^2/(2*sigma) - log(sigma)/2 ) @ emb
# NOTE: sigma is used directly as the variance (matches the torch reference).
# ---------------------------------------------------------------------------
def pos_enc_kernel(mu_ref, neg_inv_2sigma_ref, neg_half_log_sigma_ref,
                   emb_ref, pe_ref):
    ta = pe_ref.shape[0]
    k = mu_ref.shape[1]
    # positions = arange(T) repeated over K, regenerated in-kernel (no HBM read).
    row0 = pl.program_id(0) * ta
    pos = (jax.lax.broadcasted_iota(jnp.int32, (ta, k), 0) + row0
           ).astype(jnp.float32)

    a = pos - mu_ref[...]                                        # (ta, K)
    # log_p = -(a*a)/(2*sigma) - log(sigma)/2 with sigma terms precomputed
    # host-side (multiply + add, no in-kernel divide/log).
    log_p = a * a * neg_inv_2sigma_ref[...] + neg_half_log_sigma_ref[...]

    # softmax over K (dim=1 in the torch code)
    m = jnp.max(log_p, axis=1, keepdims=True)
    e = jnp.exp(log_p - m)
    inv_den = pl.reciprocal(jnp.sum(e, axis=1, keepdims=True), approx=False)
    weights = e * inv_den                                        # (ta, K)

    # (ta, K) @ (K, D) -> (ta, D)
    pe_ref[...] = jnp.dot(
        weights, emb_ref[...], preferred_element_type=jnp.float32
    ).astype(pe_ref.dtype)


# ---------------------------------------------------------------------------
# Kernel B: broadcast add on the native (B, T, D) layout.
#   pe block (1, tile_t, D) broadcasts against x block (tile_b, tile_t, D).
# ---------------------------------------------------------------------------
def add_pos_enc_kernel(pe_ref, x_ref, o_ref):
    o_ref[...] = (x_ref[...].astype(jnp.float32)
                  + pe_ref[...].astype(jnp.float32)).astype(o_ref.dtype)


def gaussian_position(x, positions, mu, sigma, embedding,
                      *, max_tile_bytes=2 * 1024 * 1024):
    """x: (B, T, D); positions: (T, K) [regenerated in-kernel];
    mu/sigma: (1, K); embedding: (K, D).  Output dtype == x.dtype."""
    del positions  # arange(T) is regenerated in-kernel via iota.
    B, T, D = x.shape
    K = embedding.shape[0]
    f32 = jnp.float32

    mu_f = mu.astype(f32).reshape(1, K)
    sigma_f = sigma.astype(f32).reshape(1, K)
    emb = embedding.astype(f32)
    # Host-side constants (remove in-kernel divide / log).
    neg_inv_2sigma = -1.0 / (2.0 * sigma_f)        # (1, K)
    neg_half_log_sigma = -0.5 * jnp.log(sigma_f)   # (1, K)

    # --- Kernel A: one-shot positional encoding, gridded over T so VMEM
    #     stays bounded even for very long sequences.
    tile_ta = T if T <= 1024 else 512  # full T, or a multiple of 8
    pos_enc = pl.pallas_call(
        pos_enc_kernel,
        out_shape=jax.ShapeDtypeStruct((T, D), x.dtype),
        grid_spec=pltpu.PrefetchScalarGridSpec(
            num_scalar_prefetch=0,
            grid=(pl.cdiv(T, tile_ta),),
            in_specs=[
                pl.BlockSpec((1, K), lambda i: (0, 0)),   # mu
                pl.BlockSpec((1, K), lambda i: (0, 0)),   # -1/(2*sigma)
                pl.BlockSpec((1, K), lambda i: (0, 0)),   # -log(sigma)/2
                pl.BlockSpec((K, D), lambda i: (0, 0)),   # embedding
            ],
            out_specs=pl.BlockSpec((tile_ta, D), lambda i: (i, 0)),
        ),
        compiler_params=pltpu.CompilerParams(
            dimension_semantics=("parallel",)),
    )(mu_f, neg_inv_2sigma, neg_half_log_sigma, emb)

    pe3 = pos_enc.reshape(1, T, D)   # add a size-1 batch dim (layout-preserving)

    # --- Kernel B tile sizing from the lane-padded VMEM footprint so that
    #     double-buffered in/out/pe blocks fit default scoped VMEM everywhere.
    itemsize = jnp.dtype(x.dtype).itemsize
    d_pad = _round_up(D, 128)
    row_pad_bytes = _round_up(T, 8) * d_pad * itemsize  # one (1, T, D) slab
    if row_pad_bytes <= max_tile_bytes:
        tile_t = T
        tile_b = max(1, min(B, max_tile_bytes // row_pad_bytes))
    else:
        tile_b = 1
        tile_t = max(8, ((max_tile_bytes // (d_pad * itemsize)) // 8) * 8)
        tile_t = min(tile_t, T)

    grid = (pl.cdiv(T, tile_t), pl.cdiv(B, tile_b))  # batch axis innermost

    out = pl.pallas_call(
        add_pos_enc_kernel,
        out_shape=jax.ShapeDtypeStruct((B, T, D), x.dtype),
        grid_spec=pltpu.PrefetchScalarGridSpec(
            num_scalar_prefetch=0,
            grid=grid,
            in_specs=[
                # pos_enc: block index is constant across the inner batch
                # axis, so Pallas skips re-fetching it for every batch tile.
                pl.BlockSpec((1, tile_t, D), lambda j, b: (0, j, 0)),
                pl.BlockSpec((tile_b, tile_t, D), lambda j, b: (b, j, 0)),
            ],
            out_specs=pl.BlockSpec((tile_b, tile_t, D),
                                   lambda j, b: (b, j, 0)),
        ),
        compiler_params=pltpu.CompilerParams(
            dimension_semantics=("parallel", "parallel")),
        input_output_aliases={1: 0},   # write the result in place over x
    )(pe3, x)

    return out


def make_params(d_model, total_size, K, key):
    # embedding: xavier_uniform_ on a (K, d_model) tensor, gain=1
    bound = math.sqrt(6.0 / (K + d_model))
    embedding = jax.random.uniform(
        key, (K, d_model), dtype=jnp.float32, minval=-bound, maxval=bound)

    # positions: arange(total_size) repeated K times along dim 1
    positions = jnp.tile(
        jnp.arange(total_size, dtype=jnp.float32)[:, None], (1, K))

    # mu: [0, interval, 2*interval, ...] with interval = total_size / K
    interval = total_size / K
    mu = (jnp.arange(K, dtype=jnp.float32) * interval)[None, :]   # (1, K)

    # sigma: all 50.0
    sigma = jnp.full((1, K), 50.0, dtype=jnp.float32)

    return positions, mu, sigma, embedding


def reference(x, positions, mu, sigma, embedding):
    a = positions - mu
    log_p = -(a * a) / (2.0 * sigma) - jnp.log(sigma) / 2.0
    M = jax.nn.softmax(log_p, axis=1)
    pos_enc = M @ embedding
    return x + pos_enc[None, :, :]


if __name__ == "__main__":
    d_model = 32
    total_size = 16   # sequence length
    K = 10
    B = 2

    key = jax.random.PRNGKey(0)
    k_emb, k_x, k_x2 = jax.random.split(key, 3)

    positions, mu, sigma, embedding = make_params(d_model, total_size, K, k_emb)
    x = jax.random.normal(k_x, (B, total_size, d_model), dtype=jnp.float32)
    ref = reference(x, positions, mu, sigma, embedding)

    # Hot path: jit with x donated so the in-place alias is honored by XLA.
    gp = jax.jit(gaussian_position, donate_argnums=(0,))
    out = jax.block_until_ready(gp(x, positions, mu, sigma, embedding))
    assert out.shape == (B, total_size, d_model)
    assert jnp.allclose(out, ref, atol=1e-5, rtol=1e-5), float(
        jnp.max(jnp.abs(out - ref)))

    # Partial-tile / multi-step-grid sanity check (forced tiny tiles so the
    # last T tile is partial and B > tile_b) with the aliased output path.
    T2, B2 = 100, 3
    pos2, mu2, sig2, emb2 = make_params(d_model, T2, K, k_emb)
    x2 = jax.random.normal(k_x2, (B2, T2, d_model), dtype=jnp.float32)
    ref2 = reference(x2, pos2, mu2, sig2, emb2)
    out2 = jax.block_until_ready(
        gaussian_position(x2, pos2, mu2, sig2, emb2,
                          max_tile_bytes=16 * 1024))
    assert jnp.allclose(out2, ref2, atol=1e-5, rtol=1e-5), float(
        jnp.max(jnp.abs(out2 - ref2)))

    print("KERNEL_OK")
</pallas_src>

<mosaic_0001>
module attributes {stable_mosaic.version = 11 : i64} {
  func.func @add_pos_enc_kernel(%arg0: i32, %arg1: i32, %arg2: memref<1x16x32xf32, #tpu.memory_space<vmem>>, %arg3: memref<2x16x32xf32, #tpu.memory_space<vmem>>, %arg4: memref<2x16x32xf32, #tpu.memory_space<vmem>>) attributes {dimension_semantics = [#tpu.dimension_semantics<parallel>, #tpu.dimension_semantics<parallel>], iteration_bounds = array<i64: 1, 1>, scalar_prefetch = 0 : i64, scratch_operands = 0 : i64, tpu.core_type = #tpu.core_type<tc>, window_params = [{transform_indices = @transform_0, window_bounds = array<i64: 1, 16, 32>}, {transform_indices = @transform_1, window_bounds = array<i64: 2, 16, 32>}, {transform_indices = @transform_2, window_bounds = array<i64: 2, 16, 32>}]} {
    %c0 = arith.constant 0 : index
    %c0_0 = arith.constant 0 : index
    %c0_1 = arith.constant 0 : index
    %0 = vector.load %arg3[%c0, %c0_0, %c0_1] : memref<2x16x32xf32, #tpu.memory_space<vmem>>, vector<2x16x32xf32>
    %c0_2 = arith.constant 0 : index
    %c0_3 = arith.constant 0 : index
    %c0_4 = arith.constant 0 : index
    %1 = vector.load %arg2[%c0_2, %c0_3, %c0_4] : memref<1x16x32xf32, #tpu.memory_space<vmem>>, vector<1x16x32xf32>
    %2 = vector.broadcast %1 : vector<1x16x32xf32> to vector<2x16x32xf32>
    %3 = arith.addf %0, %2 : vector<2x16x32xf32>
    %c0_5 = arith.constant 0 : index
    %c0_6 = arith.constant 0 : index
    %c0_7 = arith.constant 0 : index
    %4 = vector.load %arg4[%c0_5, %c0_6, %c0_7] : memref<2x16x32xf32, #tpu.memory_space<vmem>>, vector<2x16x32xf32>
    tpu.vector_store %arg4[%c0_5, %c0_6, %c0_7], %3 {strides = array<i32>} : memref<2x16x32xf32, #tpu.memory_space<vmem>>, vector<2x16x32xf32>,
    return
  }
  func.func @transform_0(%arg0: i32, %arg1: i32) -> (i32, i32, i32) {
    %c0_i32 = arith.constant 0 : i32
    %c0_i32_0 = arith.constant 0 : i32
    %c0_i32_1 = arith.constant 0 : i32
    return %c0_i32, %arg0, %c0_i32_0 : i32, i32, i32
  }
  func.func @transform_1(%arg0: i32, %arg1: i32) -> (i32, i32, i32) {
    %c0_i32 = arith.constant 0 : i32
    %c0_i32_0 = arith.constant 0 : i32
    return %arg1, %arg0, %c0_i32 : i32, i32, i32
  }
  func.func @transform_2(%arg0: i32, %arg1: i32) -> (i32, i32, i32) {
    %c0_i32 = arith.constant 0 : i32
    %c0_i32_0 = arith.constant 0 : i32
    return %arg1, %arg0, %c0_i32 : i32, i32, i32
  }
}

module attributes {stable_mosaic.version = 11 : i64} {
  func.func @pos_enc_kernel(%arg0: i32, %arg1: memref<1x10xf32, #tpu.memory_space<vmem>>, %arg2: memref<1x10xf32, #tpu.memory_space<vmem>>, %arg3: memref<1x10xf32, #tpu.memory_space<vmem>>, %arg4: memref<10x32xf32, #tpu.memory_space<vmem>>, %arg5: memref<16x32xf32, #tpu.memory_space<vmem>>) attributes {dimension_semantics = [#tpu.dimension_semantics<parallel>], iteration_bounds = array<i64: 1>, scalar_prefetch = 0 : i64, scratch_operands = 0 : i64, tpu.core_type = #tpu.core_type<tc>, window_params = [{pipeline_mode = #tpu.pipeline_mode<synchronous>, transform_indices = @transform_0, window_bounds = array<i64: 1, 10>}, {pipeline_mode = #tpu.pipeline_mode<synchronous>, transform_indices = @transform_1, window_bounds = array<i64: 1, 10>}, {pipeline_mode = #tpu.pipeline_mode<synchronous>, transform_indices = @transform_2, window_bounds = array<i64: 1, 10>}, {pipeline_mode = #tpu.pipeline_mode<synchronous>, transform_indices = @transform_3, window_bounds = array<i64: 10, 32>}, {transform_indices = @transform_4, window_bounds = array<i64: 16, 32>}]} {
    %c16_i32 = arith.constant 16 : i32
    %0 = arith.muli %arg0, %c16_i32 : i32
    %1 = tpu.iota {dimensions = array<i32: 0>} : vector<16x10xi32>
    %2 = vector.broadcast %0 : i32 to vector<16x10xi32>
    %3 = arith.addi %1, %2 : vector<16x10xi32>
    %4 = arith.sitofp %3 : vector<16x10xi32> to vector<16x10xf32>
    %c0 = arith.constant 0 : index
    %c0_0 = arith.constant 0 : index
    %5 = vector.load %arg1[%c0, %c0_0] : memref<1x10xf32, #tpu.memory_space<vmem>>, vector<1x10xf32>
    %6 = vector.broadcast %5 : vector<1x10xf32> to vector<16x10xf32>
    %7 = arith.subf %4, %6 : vector<16x10xf32>
    %8 = arith.mulf %7, %7 : vector<16x10xf32>
    %c0_1 = arith.constant 0 : index
    %c0_2 = arith.constant 0 : index
    %9 = vector.load %arg2[%c0_1, %c0_2] : memref<1x10xf32, #tpu.memory_space<vmem>>, vector<1x10xf32>
    %10 = vector.broadcast %9 : vector<1x10xf32> to vector<16x10xf32>
    %11 = arith.mulf %8, %10 : vector<16x10xf32>
    %c0_3 = arith.constant 0 : index
    %c0_4 = arith.constant 0 : index
    %12 = vector.load %arg3[%c0_3, %c0_4] : memref<1x10xf32, #tpu.memory_space<vmem>>, vector<1x10xf32>
    %13 = vector.broadcast %12 : vector<1x10xf32> to vector<16x10xf32>
    %14 = arith.addf %11, %13 : vector<16x10xf32>
    %cst = arith.constant dense<0xFF800000> : vector<16xf32>
    %15 = vector.multi_reduction <maximumf>, %14, %cst [1] : vector<16x10xf32> to vector<16xf32>
    %16 = vector.shape_cast %15 : vector<16xf32> to vector<16x1xf32>
    %17 = vector.broadcast %16 : vector<16x1xf32> to vector<16x10xf32>
    %18 = arith.subf %14, %17 : vector<16x10xf32>
    %19 = math.exp %18 : vector<16x10xf32>
    %cst_5 = arith.constant dense<0.000000e+00> : vector<16xf32>
    %20 = vector.multi_reduction <add>, %19, %cst_5 [1] : vector<16x10xf32> to vector<16xf32>
    %21 = vector.shape_cast %20 : vector<16xf32> to vector<16x1xf32>
    %22 = tpu.reciprocal %21 : vector<16x1xf32> -> vector<16x1xf32>
    %23 = vector.broadcast %22 : vector<16x1xf32> to vector<16x10xf32>
    %24 = arith.mulf %19, %23 : vector<16x10xf32>
    %c0_6 = arith.constant 0 : index
    %c0_7 = arith.constant 0 : index
    %25 = vector.load %arg4[%c0_6, %c0_7] : memref<10x32xf32, #tpu.memory_space<vmem>>, vector<10x32xf32>
    %cst_8 = arith.constant dense<0.000000e+00> : vector<16x32xf32>
    %26 = tpu.matmul %24, %25, %cst_8 {dimension_numbers = #tpu.dot_dimension_numbers<[1], [0], [0], [1], [0, 0, 1, 1], [], []>} : vector<16x10xf32>, vector<10x32xf32>, vector<16x32xf32> -> vector<16x32xf32>
    %c0_9 = arith.constant 0 : index
    %c0_10 = arith.constant 0 : index
    %27 = vector.load %arg5[%c0_9, %c0_10] : memref<16x32xf32, #tpu.memory_space<vmem>>, vector<16x32xf32>
    tpu.vector_store %arg5[%c0_9, %c0_10], %26 {strides = array<i32>} : memref<16x32xf32, #tpu.memory_space<vmem>>, vector<16x32xf32>,
    return
  }
  func.func @transform_0(%arg0: i32) -> (i32, i32) {
    %c0_i32 = arith.constant 0 : i32
    %c0_i32_0 = arith.constant 0 : i32
    %c0_i32_1 = arith.constant 0 : i32
    return %c0_i32, %c0_i32_0 : i32, i32
  }
  func.func @transform_1(%arg0: i32) -> (i32, i32) {
    %c0_i32 = arith.constant 0 : i32
    %c0_i32_0 = arith.constant 0 : i32
    %c0_i32_1 = arith.constant 0 : i32
    return %c0_i32, %c0_i32_0 : i32, i32
  }
  func.func @transform_2(%arg0: i32) -> (i32, i32) {
    %c0_i32 = arith.constant 0 : i32
    %c0_i32_0 = arith.constant 0 : i32
    %c0_i32_1 = arith.constant 0 : i32
    return %c0_i32, %c0_i32_0 : i32, i32
  }
  func.func @transform_3(%arg0: i32) -> (i32, i32) {
    %c0_i32 = arith.constant 0 : i32
    %c0_i32_0 = arith.constant 0 : i32
    %c0_i32_1 = arith.constant 0 : i32
    return %c0_i32, %c0_i32_0 : i32, i32
  }
  func.func @transform_4(%arg0: i32) -> (i32, i32) {
    %c0_i32 = arith.constant 0 : i32
    %c0_i32_0 = arith.constant 0 : i32
    return %arg0, %c0_i32 : i32, i32
  }
}

</mosaic_0001>

<bundles_post_ra>
// kernel: gaussian_position.3
= control target key start
LH: loop header
LB: loop body
LE: loop exit
PB: predicated region body
PF: predicated region fallthrough
CT: control target
= control target key end

     0   :  { %7 = vsyncpa [#allocation3], 0  ;;  %s165_s0 = inlined_call_operand.vmem [shape: f32[1,16,32], index: 0, kind: input, shape index: {}]   ;;  %s166_s1 = inlined_call_operand.hbm [shape: f32[2,16,32], index: 1, kind: input, shape index: {}, may-alias: {1,2}]   ;;  %s167_s2 = inlined_call_operand.hbm [shape: f32[2,16,32], index: 2, kind: output, shape index: {}, may-alias: {1,2}]  }
   0x1   :  { %8 = vsyncpa [#allocation4], 0  ;;  %s110_s9 = smov [#allocation2]   ;;  %s62_s13 = scalar_lea.hbm %s166_s1, 512 }
   0x2   :  { %s16_s10 = sshll.u32 %s110_s9, 4  ;;  %p63_p0 = scmp.ne.s32.totalorder %s166_s1, %s62_s13  ;;  %s17_s10 = int_to_ptr.vmem [resolvable:$true] %s16_s10 }
   0x3   :  { %p66_p1 = scmp.lt.u32.totalorder %s62_s13, %s166_s1 }
   0x5   :  { %p68_p2 = pnand %p66_p1, %p63_p0 }
   0x7   :  { %71 = shalt.err (!%p68_p2)
}
   0x8   :  { %s72_s18 = scalar_lea.vmem %s17_s10, 512  ;;  %p77_p4 = scmp.lt.s32.totalorder %s17_s10, %s17_s10 }
   0x9   :  { %p73_p3 = scmp.ne.s32.totalorder %s17_s10, %s72_s18  ;;  %p78_p5 = scmp.lt.s32.totalorder %s72_s18, %s72_s18 }
   0xb   :  { %p79_p6 = por %p78_p5, %p77_p4 }
   0xd   :  { %p80_p7 = pnand %p79_p6, %p73_p3 }
   0xf   :  { %83 = shalt.err (!%p80_p7)
}
  0x10   :  { %s111_s19 = smov 128   ;;  %s112_s20 = smov 8  }
  0x11   :  { %22 = dma.hbm_to_vmem [thread:$0]  %s166_s1, 512, %s17_s10, [#allocation3], %s111_s19, %s111_s19, %s112_s20  }
  0x12   :  { %106 = dma.done.wait [#allocation3], 512  }
  0x13   :  { %107 = vsyncadd [#allocation3], 4294966784  ;;  %s113_s23 = smov [#allocation5]   ;;  %v26_v0 = vld [vmem:[#allocation2] sm:$0xff]  ;;  %vm36_vm0 = vcmask 261120   ;;  %v27_v2 = vld [vmem:[#allocation2 + $0x8] sm:$0xff] }
  0x14   :  { %s46_s24 = sshll.u32 %s113_s23, 4  ;;  %v30_v1 = vld [vmem:[%s165_s0] sm:$0xff]  ;;  %v31_v4 = vld [vmem:[%s165_s0 + $0x8] sm:$0xff]  ;;  %v28_v5 = vld [vmem:[#allocation2 + $0x10] sm:$0xff]  ;;  %s47_s24 = int_to_ptr.vmem [resolvable:$true] %s46_s24 }
  0x15   :  { %v32_v3 = vadd.f32 %v30_v1, %v26_v0  ;;  %v29_v6 = vld [vmem:[#allocation2 + $0x18] sm:$0xff]  ;;  %v33_v7 = vadd.f32 %v31_v4, %v27_v2  ;;  %v34_v8 = vadd.f32 %v30_v1, %v28_v5  ;;  %s84_s1 = scalar_lea.vmem %s47_s24, 512  ;;  %p89_p9 = scmp.lt.s32.totalorder %s47_s24, %s47_s24 }
  0x16   :  { %v35_v9 = vadd.f32 %v31_v4, %v29_v6  ;;  %p85_p8 = scmp.ne.s32.totalorder %s47_s24, %s84_s1  ;;  %p90_p10 = scmp.lt.s32.totalorder %s84_s1, %s84_s1 }
  0x17   :  { %37 = vst.msk [vmem:[#allocation5] sm:$0xff] %vm36_vm0, %v32_v3  ;;  %38 = vst.msk [vmem:[#allocation5 + $0x8] sm:$0xff] %vm36_vm0, %v33_v7 }
  0x18   :  { %39 = vst.msk [vmem:[#allocation5 + $0x10] sm:$0xff] %vm36_vm0, %v34_v8  ;;  %40 = vst.msk [vmem:[#allocation5 + $0x18] sm:$0xff] %vm36_vm0, %v35_v9  ;;  %p91_p11 = por %p90_p10, %p89_p9 }
  0x1a   :  { %p92_p12 = pnand %p91_p11, %p85_p8 }
  0x1c   :  { %95 = shalt.err (!%p92_p12)
}
  0x1d   :  { %s96_s0 = scalar_lea.hbm %s167_s2, 512 }
  0x1e   :  { %p97_p13 = scmp.ne.s32.totalorder %s167_s2, %s96_s0  ;;  %p100_p0 = scmp.lt.u32.totalorder %s96_s0, %s167_s2 }
  0x20   :  { %p102_p1 = pnand %p100_p0, %p97_p13 }
  0x22   :  { %105 = shalt.err (!%p102_p1)
}
  0x23   :  { %52 = dma.vmem_to_hbm [thread:$0]  %s47_s24, 512, %s167_s2, [#allocation4], %s111_s19, %s111_s19, %s112_s20  }
  0x24   :  { %108 = dma.done.wait [#allocation4], 512  }
  0x25   :  { %109 = vsyncadd [#allocation4], 4294966784 }
  0x26   :  { %56 = vsyncpa [#allocation3], 1 }
  0x27   :  { %57 = vsyncpa [#allocation4], 1 }

// kernel: gaussian_position.2
= control target key start
LH: loop header
LB: loop body
LE: loop exit
PB: predicated region body
PF: predicated region fallthrough
CT: control target
= control target key end

     0   :  { %v18_v0 = vlaneseq  ;;  %vm55_vm0 = vcmask 80896   ;;  %vm86_vm1 = vcmask 1041408   ;;  %vm204_vm2 = vmmov 1   ;;  %s257_s0 = inlined_call_operand.vmem [shape: f32[1,10], index: 0, kind: input, shape index: {}]   ;;  %s258_s1 = inlined_call_operand.vmem [shape: f32[1,10], index: 1, kind: input, shape index: {}]   ;;  %s259_s2 = inlined_call_operand.vmem [shape: f32[1,10], index: 2, kind: input, shape index: {}]   ;;  %s260_s3 = inlined_call_operand.vmem [shape: f32[10,32], index: 3, kind: input, shape index: {}]   ;;  %s261_s4 = inlined_call_operand.vmem [shape: f32[16,32], index: 4, kind: output, shape index: {}]  }
   0x1   :  { %v172_v2 = vld [vmem:[%s257_s0] ss:$0 sm:$0xff]  ;;  %v79_v29 = vld [vmem:[%s260_s3 + $0x8] sm:$0x3]  ;;  %vm190_vm3 = vmpackc.low %vm86_vm1, %vm204_vm2  ;;  %vm165_vm4 = vcmask 261120  }
   0x2   :  { %v19_v1 = vshrl.u32 %v18_v0, 7  ;;  %v173_v7 = vld [vmem:[%s258_s1] ss:$0 sm:$0xff] }
   0x3   :  { %v174_v10 = vld [vmem:[%s259_s2] ss:$0 sm:$0xff] }
   0x4   :  { %v24_v3 = vcvt.s32.f32 %v19_v1  ;;  %v20_v4 = vadd.s32 8, %v19_v1  ;;  %v78_v28 = vld [vmem:[%s260_s3] sm:$0xff] }
   0x5   :  { %v189_v30 = vpack.c.bf16 %v79_v29, %v78_v28 }
   0x6   :  { %v33_v5 = vsub.f32 %v24_v3, %v172_v2  ;;  %v25_v6 = vcvt.s32.f32 %v20_v4 }
   0x7   :  { %191 = vmatprep.subr.msk.bf16.mxu0 %vm190_vm3, %v189_v30 }
   0x8   :  { %v35_v8 = vmul.f32 %v33_v5, %v33_v5  ;;  %v34_v9 = vsub.f32 %v25_v6, %v172_v2  ;;  %194 = vmatpush3.bf16.msk.msra.mxu0 %vm190_vm3, %v189_v30 }
   0xa   :  { %v44_v11 = vmul.f32 %v173_v7, %v35_v8  ;;  %v36_v12 = vmul.f32 %v34_v9, %v34_v9 }
   0xc   :  { %v53_v13 = vadd.f32 %v174_v10, %v44_v11  ;;  %v45_v14 = vmul.f32 %v173_v7, %v36_v12 }
   0xe   :  { %v56_v15 = vsel %vm55_vm0, %v53_v13, -inf  ;;  %v54_v16 = vadd.f32 %v174_v10, %v45_v14 }
   0xf   :  { %57 = vmax.xlane.f32.xlu0 %v56_v15 }
  0x10   :  { %v59_v17 = vsel %vm55_vm0, %v54_v16, -inf }
  0x13   :  { %60 = vmax.xlane.f32.xlu0 %v59_v17 }
  0x9c   :  { %v58_v18 = vpop.xlane.xlu0 %57 }
  0x9d   :  { %v62_v19 = vsub.f32 %v53_v13, %v58_v18 }
  0x9f   :  { %v64_v20 = vmul.f32 1.442695, %v62_v19 }
  0xa0   :  { %v61_v21 = vpop.xlane.xlu0 %60 }
  0xa1   :  { %196 = vpow2.f32 %v64_v20  ;;  %v63_v22 = vsub.f32 %v54_v16, %v61_v21 }
  0xa3   :  { %v66_v23 = vmul.f32 1.442695, %v63_v22 }
  0xa5   :  { %198 = vpow2.f32 %v66_v23 }
  0xab   :  { %v197_v24 = vpop.eup %196 }
  0xac   :  { %v68_v25 = vsel %vm55_vm0, %v197_v24, 0.0 }
  0xad   :  { %69 = vadd.xlane.f32.xlu1 %v68_v25 }
  0xaf   :  { %v199_v26 = vpop.eup %198 }
  0xb0   :  { %v71_v27 = vsel %vm55_vm0, %v199_v26, 0.0 }
  0xb1   :  { %72 = vadd.xlane.f32.xlu1 %v71_v27 }
 0x13a   :  { %v70_v31 = vpop.xlane.xlu1 %69 }
 0x13b   :  { %200 = vrcp.f32 %v70_v31 }
 0x13e   :  { %v73_v32 = vpop.xlane.xlu1 %72 }
 0x13f   :  { %202 = vrcp.f32 %v73_v32 }
 0x145   :  { %v201_v33 = vpop.eup %200 }
 0x146   :  { %v76_v34 = vmul.f32 %v201_v33, %v197_v24 }
 0x148   :  { %186 = vmatprep.mubr.msk.f32.mxu0 %vm55_vm0, %v76_v34 }
 0x149   :  { %v203_v35 = vpop.eup %202 }
 0x14a   :  { %v77_v36 = vmul.f32 %v203_v35, %v199_v26 }
 0x14c   :  { %187 = vmatmul.mubr.msk.f32.vlgmr.msra.gmra.mrb[0].mxu0 %vm55_vm0, %v77_v36 }
 0x21f   :  { %v188_v37 = vpop.f32.mrb[0].mxu0 }
 0x220   :  { %167 = vst.msk [vmem:[%s261_s4 + $0x8] sm:$0xff] %vm165_vm4, %v188_v37  ;;  %v156_v38 = vpop.f32.mrb[1].mxu0 }
 0x221   :  { %166 = vst.msk [vmem:[%s261_s4] sm:$0xff] %vm165_vm4, %v156_v38 }

</bundles_post_ra>
